<compile_context>
chip_gen: v6e
topology: v6e:2x2x1
jax: 0.10.0
libtpu: 0.0.40
codegen_flags: <defaults>
</compile_context>

<pallas_src>
import functools

import jax
import jax.numpy as jnp
from jax import lax
from jax.experimental import pallas as pl
from jax.experimental.pallas import tpu as pltpu

_EPS = 1e-5


def _le_block_kernel(*refs, N, H, W, Cin, Cout, lt, act):
    """Fused LEResidualBlock forward over the whole (small) batch.

    Inputs (all lane-dense, built in the wrapper):
      xrp   : (N, H+2, W*Cin)      row-padded, lane-flattened input x
      bd1   : (3, W*Cin, W*Cin)    block-banded conv1 weights (one per vertical tap)
      bd2a  : (3, W*Cin, W*Cout)   block-banded conv2 weights for the out1 channels
      s1/t1 : (W*Cin, Cin)/(Cin, W*Cin)   per-channel reduce / lane-broadcast matrices
      s2/t2 : (W*Cout, Cout)/(Cout, W*Cout)
      g1,b1,g2,b2 : (1, C)         BatchNorm affine parameters
      [lt only] bdl  : (3, W*Cin, W*Cin)   block-banded depthwise (linear1) weights
      [lt only] bd2b : (3, W*Cin, W*Cout)  block-banded conv2 weights for the x1 channels
      [lt only] e1,e2: (W*Cin, W*Cout)     residual channel-interleave matrices
    Output:
      out   : (N*H, W*Cout)        lane-dense result slab
    Scratch:
      p1    : (N, H+2, W*Cin)      row-padded relu(bn1(conv1(x)))
      [lt only] px1 : (N, H+2, W*Cin)  row-padded linear1(out1)
    """
    if lt:
        (xrp_ref, bd1_ref, bd2a_ref, s1_ref, t1_ref, s2_ref, t2_ref,
         g1_ref, b1_ref, g2_ref, b2_ref, bdl_ref, bd2b_ref, e1_ref, e2_ref,
         out_ref, p1_ref, px1_ref) = refs
    else:
        (xrp_ref, bd1_ref, bd2a_ref, s1_ref, t1_ref, s2_ref, t2_ref,
         g1_ref, b1_ref, g2_ref, b2_ref, out_ref, p1_ref) = refs

    f32 = jnp.float32
    R = N * H
    L1 = W * Cin
    L2 = W * Cout
    cnt = float(N * H * W)

    def mm(a, b):
        return jnp.dot(a, b, preferred_element_type=f32)

    # ---------------- conv1: 3 row-shifted slabs @ block-banded weights ----------------
    acc1 = jnp.zeros((R, L1), f32)
    for dh in range(3):  # unrolled at trace time
        slab = xrp_ref[:, dh:dh + H, :].reshape(R, L1)
        acc1 = acc1 + mm(slab, bd1_ref[dh])

    # ---------------- bn1 (training-mode batch statistics) + relu ----------------
    mean1 = mm(jnp.sum(acc1, axis=0, keepdims=True), s1_ref[...]) / cnt       # (1, Cin)
    cen1 = acc1 - mm(mean1, t1_ref[...])                                      # centered
    var1 = mm(jnp.sum(cen1 * cen1, axis=0, keepdims=True), s1_ref[...]) / cnt  # biased var
    scale1 = g1_ref[...] * lax.rsqrt(var1 + _EPS)                             # (1, Cin)
    bias1 = b1_ref[...] - mean1 * scale1
    out1 = jnp.maximum(acc1 * mm(scale1, t1_ref[...]) + mm(bias1, t1_ref[...]), 0.0)

    # Stash out1 into a row-padded scratch slab (vertical zero padding for the next convs).
    p1_ref[...] = jnp.zeros_like(p1_ref)
    p1_ref[:, 1:H + 1, :] = out1.reshape(N, H, L1)

    # ---------------- optional depthwise 3x3 (linear1) on out1 ----------------
    if lt:
        accd = jnp.zeros((R, L1), f32)
        for dh in range(3):
            slab = p1_ref[:, dh:dh + H, :].reshape(R, L1)
            accd = accd + mm(slab, bdl_ref[dh])
        px1_ref[...] = jnp.zeros_like(px1_ref)
        px1_ref[:, 1:H + 1, :] = accd.reshape(N, H, L1)

    # ---------------- conv2 (input channels = [out1] or [out1 ; x1]) ----------------
    acc2 = jnp.zeros((R, L2), f32)
    for dh in range(3):
        slab = p1_ref[:, dh:dh + H, :].reshape(R, L1)
        acc2 = acc2 + mm(slab, bd2a_ref[dh])
    if lt:
        for dh in range(3):
            slab = px1_ref[:, dh:dh + H, :].reshape(R, L1)
            acc2 = acc2 + mm(slab, bd2b_ref[dh])

    # ---------------- bn2 + residual add + last activation ----------------
    mean2 = mm(jnp.sum(acc2, axis=0, keepdims=True), s2_ref[...]) / cnt       # (1, Cout)
    cen2 = acc2 - mm(mean2, t2_ref[...])
    var2 = mm(jnp.sum(cen2 * cen2, axis=0, keepdims=True), s2_ref[...]) / cnt
    scale2 = g2_ref[...] * lax.rsqrt(var2 + _EPS)
    bias2 = b2_ref[...] - mean2 * scale2
    bn2 = acc2 * mm(scale2, t2_ref[...]) + mm(bias2, t2_ref[...])             # (R, L2)

    x_inner = xrp_ref[:, 1:H + 1, :].reshape(R, L1)
    if lt:
        # residual = cat([x, out1], channel)  ->  interleave into the w*Cout+c lane layout
        res = mm(x_inner, e1_ref[...]) + mm(out1, e2_ref[...])
    else:
        res = x_inner
    y = bn2 + res
    y = jax.nn.sigmoid(y) if act == 'sigmoid' else jnp.maximum(y, 0.0)
    out_ref[...] = y


def le_residual_block(x_nhwc, params, *, linear_transformation=False,
                      last_activation='relu'):
    """Pallas wrapper. x_nhwc: (N, H, W, Cin) float32."""
    N, H, W, Cin = x_nhwc.shape
    cmid, cout = params['w2_hwio'].shape[2], params['w2_hwio'].shape[3]
    if linear_transformation:
        assert cmid == 2 * Cin and cout == 2 * Cin
    else:
        assert cmid == Cin and cout == Cin

    f32 = jnp.float32
    L1, L2 = W * Cin, W * cout

    w1 = params['w1_hwio'].astype(f32)          # (3, 3, Cin, Cin)
    w2 = params['w2_hwio'].astype(f32)          # (3, 3, Cmid, Cout)
    wl = params['wl_hwio'].astype(f32)          # (3, 3, 1, Cin)
    g1 = params['g1'].reshape(1, Cin).astype(f32)
    b1 = params['b1'].reshape(1, Cin).astype(f32)
    g2 = params['g2'].reshape(1, cout).astype(f32)
    b2 = params['b2'].reshape(1, cout).astype(f32)

    # Horizontal-tap shift matrices (also encode the horizontal zero padding).
    shift = [jnp.eye(W, W, k=1 - dw, dtype=f32) for dw in range(3)]

    def banded(w_slice):
        # (3, 3, Ci, Co) -> (3, W*Ci, W*Co) block-banded matrices, one per vertical tap.
        return jnp.stack([
            sum(jnp.kron(shift[dw], w_slice[dh, dw]) for dw in range(3))
            for dh in range(3)])

    bd1 = banded(w1)                                            # (3, L1, L1)
    bd2a = banded(w2[:, :, :Cin, :])                            # (3, L1, L2)
    s1 = jnp.kron(jnp.ones((W, 1), f32), jnp.eye(Cin, dtype=f32))   # (L1, Cin)
    t1 = s1.T
    s2 = jnp.kron(jnp.ones((W, 1), f32), jnp.eye(cout, dtype=f32))  # (L2, cout)
    t2 = s2.T

    # Row-padded, lane-flattened input: (N, H+2, W*Cin).
    xrp = jnp.pad(x_nhwc.astype(f32).reshape(N, H, L1), ((0, 0), (1, 1), (0, 0)))

    inputs = [xrp, bd1, bd2a, s1, t1, s2, t2, g1, b1, g2, b2]
    scratch = [pltpu.VMEM((N, H + 2, L1), f32)]
    if linear_transformation:
        bdl = jnp.stack([
            sum(jnp.kron(shift[dw], jnp.diag(wl[dh, dw, 0, :])) for dw in range(3))
            for dh in range(3)])                                # (3, L1, L1)
        bd2b = banded(w2[:, :, Cin:, :])                        # (3, L1, L2)
        e1 = jnp.kron(jnp.eye(W, dtype=f32), jnp.eye(Cin, cout, dtype=f32))        # x -> ch [0, Cin)
        e2 = jnp.kron(jnp.eye(W, dtype=f32), jnp.eye(Cin, cout, k=Cin, dtype=f32)) # out1 -> ch [Cin, 2Cin)
        inputs += [bdl, bd2b, e1, e2]
        scratch += [pltpu.VMEM((N, H + 2, L1), f32)]

    kernel = functools.partial(_le_block_kernel, N=N, H=H, W=W, Cin=Cin, Cout=cout,
                               lt=linear_transformation, act=last_activation)

    def full_spec(a):
        nd = a.ndim
        return pl.BlockSpec(a.shape, lambda i, _nd=nd: (0,) * _nd)

    # Single grid step with whole-array blocks: BatchNorm needs full-batch statistics and
    # the entire working set (~0.4 MB) fits comfortably in VMEM on v5e/v6e/v7x.
    grid_spec = pltpu.PrefetchScalarGridSpec(
        num_scalar_prefetch=0,
        grid=(1,),
        in_specs=[full_spec(a) for a in inputs],
        out_specs=pl.BlockSpec((N * H, L2), lambda i: (0, 0)),
        scratch_shapes=scratch,
    )

    out_flat = pl.pallas_call(
        kernel,
        out_shape=jax.ShapeDtypeStruct((N * H, L2), f32),
        grid_spec=grid_spec,
        compiler_params=pltpu.CompilerParams(dimension_semantics=("arbitrary",)),
    )(*inputs)

    return out_flat.reshape(N, H, W, cout)


# ------------------------- pure-JAX reference (for checking) -------------------------
def _ref_block(x, p, lt, act):
    def conv(inp, w, groups=1):
        return lax.conv_general_dilated(
            inp, w, (1, 1), 'SAME',
            dimension_numbers=('NHWC', 'HWIO', 'NHWC'),
            feature_group_count=groups)

    def bn(inp, g, b):
        m = jnp.mean(inp, axis=(0, 1, 2), keepdims=True)
        v = jnp.mean(jnp.square(inp - m), axis=(0, 1, 2), keepdims=True)
        return (inp - m) * lax.rsqrt(v + _EPS) * g.reshape(1, 1, 1, -1) + b.reshape(1, 1, 1, -1)

    out = jax.nn.relu(bn(conv(x, p['w1_hwio']), p['g1'], p['b1']))
    res = x
    if lt:
        res = jnp.concatenate([x, out], axis=-1)
        x1 = conv(out, p['wl_hwio'], groups=x.shape[-1])
        out = jnp.concatenate([out, x1], axis=-1)
    out = bn(conv(out, p['w2_hwio']), p['g2'], p['b2'])
    out = out + res
    return jax.nn.sigmoid(out) if act == 'sigmoid' else jax.nn.relu(out)


def _make_params(key, cin, cout, lt):
    cmid = 2 * cin if lt else cin
    ks = jax.random.split(key, 7)
    return dict(
        w1_hwio=0.2 * jax.random.normal(ks[0], (3, 3, cin, cin), jnp.float32),
        wl_hwio=0.2 * jax.random.normal(ks[1], (3, 3, 1, cin), jnp.float32),
        w2_hwio=0.2 * jax.random.normal(ks[2], (3, 3, cmid, cout), jnp.float32),
        g1=1.0 + 0.1 * jax.random.normal(ks[3], (cin,), jnp.float32),
        b1=0.1 * jax.random.normal(ks[4], (cin,), jnp.float32),
        g2=1.0 + 0.1 * jax.random.normal(ks[5], (cout,), jnp.float32),
        b2=0.1 * jax.random.normal(ks[6], (cout,), jnp.float32),
    )


if __name__ == "__main__":
    key = jax.random.PRNGKey(0)
    kx, kp1, kp2 = jax.random.split(key, 3)

    N, Cin, H, W = 2, 4, 16, 16
    # PyTorch input would be NCHW (2, 4, 16, 16); the kernel consumes NHWC.
    x_nchw = jax.random.normal(kx, (N, Cin, H, W), jnp.float32)
    x_nhwc = jnp.transpose(x_nchw, (0, 2, 3, 1))

    configs = [
        # (linear_transformation, out_channels, last_activation, param_key)
        (False, Cin, 'relu', kp1),
        (True, 2 * Cin, 'sigmoid', kp2),
    ]

    for lt, cout, act, kp in configs:
        params = _make_params(kp, Cin, cout, lt)
        out = le_residual_block(x_nhwc, params,
                                linear_transformation=lt, last_activation=act)
        out = jax.block_until_ready(out)
        ref = _ref_block(x_nhwc, params, lt, act)
        assert out.shape == ref.shape == (N, H, W, cout)
        err = float(jnp.max(jnp.abs(out - ref)))
        # 5e-3: both the kernel (MXU matmuls) and the XLA conv reference may round
        # operands at less-than-f32 MXU precision along differently-ordered paths.
        if not (err < 5e-3):
            raise AssertionError(f"mismatch vs reference (lt={lt}): max abs err {err}")

    print("KERNEL_OK")
</pallas_src>

<mosaic_0001>
module attributes {stable_mosaic.version = 11 : i64} {
  func.func @_le_block_kernel(%arg0: i32, %arg1: memref<2x18x64xf32, #tpu.memory_space<vmem>>, %arg2: memref<3x64x64xf32, #tpu.memory_space<vmem>>, %arg3: memref<3x64x64xf32, #tpu.memory_space<vmem>>, %arg4: memref<64x4xf32, #tpu.memory_space<vmem>>, %arg5: memref<4x64xf32, #tpu.memory_space<vmem>>, %arg6: memref<64x4xf32, #tpu.memory_space<vmem>>, %arg7: memref<4x64xf32, #tpu.memory_space<vmem>>, %arg8: memref<1x4xf32, #tpu.memory_space<vmem>>, %arg9: memref<1x4xf32, #tpu.memory_space<vmem>>, %arg10: memref<1x4xf32, #tpu.memory_space<vmem>>, %arg11: memref<1x4xf32, #tpu.memory_space<vmem>>, %arg12: memref<32x64xf32, #tpu.memory_space<vmem>>, %arg13: memref<2x18x64xf32, #tpu.memory_space<vmem>>) attributes {dimension_semantics = [#tpu.dimension_semantics<arbitrary>], iteration_bounds = array<i64: 1>, scalar_prefetch = 0 : i64, scratch_operands = 1 : i64, tpu.core_type = #tpu.core_type<tc>, window_params = [{pipeline_mode = #tpu.pipeline_mode<synchronous>, transform_indices = @transform_0, window_bounds = array<i64: 2, 18, 64>}, {pipeline_mode = #tpu.pipeline_mode<synchronous>, transform_indices = @transform_1, window_bounds = array<i64: 3, 64, 64>}, {pipeline_mode = #tpu.pipeline_mode<synchronous>, transform_indices = @transform_2, window_bounds = array<i64: 3, 64, 64>}, {pipeline_mode = #tpu.pipeline_mode<synchronous>, transform_indices = @transform_3, window_bounds = array<i64: 64, 4>}, {pipeline_mode = #tpu.pipeline_mode<synchronous>, transform_indices = @transform_4, window_bounds = array<i64: 4, 64>}, {pipeline_mode = #tpu.pipeline_mode<synchronous>, transform_indices = @transform_5, window_bounds = array<i64: 64, 4>}, {pipeline_mode = #tpu.pipeline_mode<synchronous>, transform_indices = @transform_6, window_bounds = array<i64: 4, 64>}, {pipeline_mode = #tpu.pipeline_mode<synchronous>, transform_indices = @transform_7, window_bounds = array<i64: 1, 4>}, {pipeline_mode = #tpu.pipeline_mode<synchronous>, transform_indices = @transform_8, window_bounds = array<i64: 1, 4>}, {pipeline_mode = #tpu.pipeline_mode<synchronous>, transform_indices = @transform_9, window_bounds = array<i64: 1, 4>}, {pipeline_mode = #tpu.pipeline_mode<synchronous>, transform_indices = @transform_10, window_bounds = array<i64: 1, 4>}, {pipeline_mode = #tpu.pipeline_mode<synchronous>, transform_indices = @transform_11, window_bounds = array<i64: 32, 64>}]} {
    %cst = arith.constant 0.000000e+00 : f32
    %0 = vector.broadcast %cst : f32 to vector<32x64xf32>
    %c0 = arith.constant 0 : index
    %c0_0 = arith.constant 0 : index
    %c0_1 = arith.constant 0 : index
    %1 = vector.load %arg1[%c0, %c0_0, %c0_1] : memref<2x18x64xf32, #tpu.memory_space<vmem>>, vector<2x16x64xf32>
    %2 = vector.shape_cast %1 : vector<2x16x64xf32> to vector<32x64xf32>
    %c0_2 = arith.constant 0 : index
    %c0_3 = arith.constant 0 : index
    %c0_4 = arith.constant 0 : index
    %3 = vector.load %arg2[%c0_2, %c0_3, %c0_4] : memref<3x64x64xf32, #tpu.memory_space<vmem>>, vector<1x64x64xf32>
    %4 = vector.shape_cast %3 : vector<1x64x64xf32> to vector<64x64xf32>
    %cst_5 = arith.constant dense<0.000000e+00> : vector<32x64xf32>
    %5 = tpu.matmul %2, %4, %cst_5 {dimension_numbers = #tpu.dot_dimension_numbers<[1], [0], [0], [1], [0, 0, 1, 1], [], []>} : vector<32x64xf32>, vector<64x64xf32>, vector<32x64xf32> -> vector<32x64xf32>
    %6 = arith.addf %0, %5 : vector<32x64xf32>
    %c0_6 = arith.constant 0 : index
    %c1 = arith.constant 1 : index
    %c0_7 = arith.constant 0 : index
    %7 = vector.load %arg1[%c0_6, %c1, %c0_7] : memref<2x18x64xf32, #tpu.memory_space<vmem>>, vector<2x16x64xf32>
    %8 = vector.shape_cast %7 : vector<2x16x64xf32> to vector<32x64xf32>
    %c1_8 = arith.constant 1 : index
    %c0_9 = arith.constant 0 : index
    %c0_10 = arith.constant 0 : index
    %9 = vector.load %arg2[%c1_8, %c0_9, %c0_10] : memref<3x64x64xf32, #tpu.memory_space<vmem>>, vector<1x64x64xf32>
    %10 = vector.shape_cast %9 : vector<1x64x64xf32> to vector<64x64xf32>
    %cst_11 = arith.constant dense<0.000000e+00> : vector<32x64xf32>
    %11 = tpu.matmul %8, %10, %cst_11 {dimension_numbers = #tpu.dot_dimension_numbers<[1], [0], [0], [1], [0, 0, 1, 1], [], []>} : vector<32x64xf32>, vector<64x64xf32>, vector<32x64xf32> -> vector<32x64xf32>
    %12 = arith.addf %6, %11 : vector<32x64xf32>
    %c0_12 = arith.constant 0 : index
    %c2 = arith.constant 2 : index
    %c0_13 = arith.constant 0 : index
    %13 = vector.load %arg1[%c0_12, %c2, %c0_13] : memref<2x18x64xf32, #tpu.memory_space<vmem>>, vector<2x16x64xf32>
    %14 = vector.shape_cast %13 : vector<2x16x64xf32> to vector<32x64xf32>
    %c2_14 = arith.constant 2 : index
    %c0_15 = arith.constant 0 : index
    %c0_16 = arith.constant 0 : index
    %15 = vector.load %arg2[%c2_14, %c0_15, %c0_16] : memref<3x64x64xf32, #tpu.memory_space<vmem>>, vector<1x64x64xf32>
    %16 = vector.shape_cast %15 : vector<1x64x64xf32> to vector<64x64xf32>
    %cst_17 = arith.constant dense<0.000000e+00> : vector<32x64xf32>
    %17 = tpu.matmul %14, %16, %cst_17 {dimension_numbers = #tpu.dot_dimension_numbers<[1], [0], [0], [1], [0, 0, 1, 1], [], []>} : vector<32x64xf32>, vector<64x64xf32>, vector<32x64xf32> -> vector<32x64xf32>
    %18 = arith.addf %12, %17 : vector<32x64xf32>
    %cst_18 = arith.constant dense<0.000000e+00> : vector<64xf32>
    %19 = vector.multi_reduction <add>, %18, %cst_18 [0] : vector<32x64xf32> to vector<64xf32>
    %20 = vector.shape_cast %19 : vector<64xf32> to vector<1x64xf32>
    %c0_19 = arith.constant 0 : index
    %c0_20 = arith.constant 0 : index
    %21 = vector.load %arg4[%c0_19, %c0_20] : memref<64x4xf32, #tpu.memory_space<vmem>>, vector<64x4xf32>
    %cst_21 = arith.constant dense<0.000000e+00> : vector<1x4xf32>
    %22 = tpu.matmul %20, %21, %cst_21 {dimension_numbers = #tpu.dot_dimension_numbers<[1], [0], [0], [1], [0, 0, 1, 1], [], []>} : vector<1x64xf32>, vector<64x4xf32>, vector<1x4xf32> -> vector<1x4xf32>
    %cst_22 = arith.constant 5.120000e+02 : f32
    %23 = vector.broadcast %cst_22 : f32 to vector<1x4xf32>
    %24 = arith.divf %22, %23 : vector<1x4xf32>
    %c0_23 = arith.constant 0 : index
    %c0_24 = arith.constant 0 : index
    %25 = vector.load %arg5[%c0_23, %c0_24] : memref<4x64xf32, #tpu.memory_space<vmem>>, vector<4x64xf32>
    %cst_25 = arith.constant dense<0.000000e+00> : vector<1x64xf32>
    %26 = tpu.matmul %24, %25, %cst_25 {dimension_numbers = #tpu.dot_dimension_numbers<[1], [0], [0], [1], [0, 0, 1, 1], [], []>} : vector<1x4xf32>, vector<4x64xf32>, vector<1x64xf32> -> vector<1x64xf32>
    %27 = vector.broadcast %26 : vector<1x64xf32> to vector<32x64xf32>
    %28 = arith.subf %18, %27 : vector<32x64xf32>
    %29 = arith.mulf %28, %28 : vector<32x64xf32>
    %cst_26 = arith.constant dense<0.000000e+00> : vector<64xf32>
    %30 = vector.multi_reduction <add>, %29, %cst_26 [0] : vector<32x64xf32> to vector<64xf32>
    %31 = vector.shape_cast %30 : vector<64xf32> to vector<1x64xf32>
    %c0_27 = arith.constant 0 : index
    %c0_28 = arith.constant 0 : index
    %32 = vector.load %arg4[%c0_27, %c0_28] : memref<64x4xf32, #tpu.memory_space<vmem>>, vector<64x4xf32>
    %cst_29 = arith.constant dense<0.000000e+00> : vector<1x4xf32>
    %33 = tpu.matmul %31, %32, %cst_29 {dimension_numbers = #tpu.dot_dimension_numbers<[1], [0], [0], [1], [0, 0, 1, 1], [], []>} : vector<1x64xf32>, vector<64x4xf32>, vector<1x4xf32> -> vector<1x4xf32>
    %cst_30 = arith.constant 5.120000e+02 : f32
    %34 = vector.broadcast %cst_30 : f32 to vector<1x4xf32>
    %35 = arith.divf %33, %34 : vector<1x4xf32>
    %c0_31 = arith.constant 0 : index
    %c0_32 = arith.constant 0 : index
    %36 = vector.load %arg8[%c0_31, %c0_32] : memref<1x4xf32, #tpu.memory_space<vmem>>, vector<1x4xf32>
    %cst_33 = arith.constant 9.99999974E-6 : f32
    %37 = vector.broadcast %cst_33 : f32 to vector<1x4xf32>
    %38 = arith.addf %35, %37 : vector<1x4xf32>
    %39 = math.rsqrt %38 : vector<1x4xf32>
    %40 = arith.mulf %36, %39 : vector<1x4xf32>
    %c0_34 = arith.constant 0 : index
    %c0_35 = arith.constant 0 : index
    %41 = vector.load %arg9[%c0_34, %c0_35] : memref<1x4xf32, #tpu.memory_space<vmem>>, vector<1x4xf32>
    %42 = arith.mulf %24, %40 : vector<1x4xf32>
    %43 = arith.subf %41, %42 : vector<1x4xf32>
    %c0_36 = arith.constant 0 : index
    %c0_37 = arith.constant 0 : index
    %44 = vector.load %arg5[%c0_36, %c0_37] : memref<4x64xf32, #tpu.memory_space<vmem>>, vector<4x64xf32>
    %cst_38 = arith.constant dense<0.000000e+00> : vector<1x64xf32>
    %45 = tpu.matmul %40, %44, %cst_38 {dimension_numbers = #tpu.dot_dimension_numbers<[1], [0], [0], [1], [0, 0, 1, 1], [], []>} : vector<1x4xf32>, vector<4x64xf32>, vector<1x64xf32> -> vector<1x64xf32>
    %46 = vector.broadcast %45 : vector<1x64xf32> to vector<32x64xf32>
    %47 = arith.mulf %18, %46 : vector<32x64xf32>
    %c0_39 = arith.constant 0 : index
    %c0_40 = arith.constant 0 : index
    %48 = vector.load %arg5[%c0_39, %c0_40] : memref<4x64xf32, #tpu.memory_space<vmem>>, vector<4x64xf32>
    %cst_41 = arith.constant dense<0.000000e+00> : vector<1x64xf32>
    %49 = tpu.matmul %43, %48, %cst_41 {dimension_numbers = #tpu.dot_dimension_numbers<[1], [0], [0], [1], [0, 0, 1, 1], [], []>} : vector<1x4xf32>, vector<4x64xf32>, vector<1x64xf32> -> vector<1x64xf32>
    %50 = vector.broadcast %49 : vector<1x64xf32> to vector<32x64xf32>
    %51 = arith.addf %47, %50 : vector<32x64xf32>
    %cst_42 = arith.constant 0.000000e+00 : f32
    %52 = vector.broadcast %cst_42 : f32 to vector<32x64xf32>
    %53 = arith.maximumf %51, %52 : vector<32x64xf32>
    %cst_43 = arith.constant 0.000000e+00 : f32
    %54 = vector.broadcast %cst_43 : f32 to vector<2x18x64xf32>
    %c0_44 = arith.constant 0 : index
    %c0_45 = arith.constant 0 : index
    %c0_46 = arith.constant 0 : index
    %55 = vector.load %arg13[%c0_44, %c0_45, %c0_46] : memref<2x18x64xf32, #tpu.memory_space<vmem>>, vector<2x18x64xf32>
    tpu.vector_store %arg13[%c0_44, %c0_45, %c0_46], %54 {strides = array<i32>} : memref<2x18x64xf32, #tpu.memory_space<vmem>>, vector<2x18x64xf32>,
    %56 = vector.shape_cast %53 : vector<32x64xf32> to vector<2x16x64xf32>
    %c0_47 = arith.constant 0 : index
    %c1_48 = arith.constant 1 : index
    %c0_49 = arith.constant 0 : index
    %57 = vector.load %arg13[%c0_47, %c1_48, %c0_49] : memref<2x18x64xf32, #tpu.memory_space<vmem>>, vector<2x16x64xf32>
    tpu.vector_store %arg13[%c0_47, %c1_48, %c0_49], %56 {strides = array<i32>} : memref<2x18x64xf32, #tpu.memory_space<vmem>>, vector<2x16x64xf32>,
    %cst_50 = arith.constant 0.000000e+00 : f32
    %58 = vector.broadcast %cst_50 : f32 to vector<32x64xf32>
    %c0_51 = arith.constant 0 : index
    %c0_52 = arith.constant 0 : index
    %c0_53 = arith.constant 0 : index
    %59 = vector.load %arg13[%c0_51, %c0_52, %c0_53] : memref<2x18x64xf32, #tpu.memory_space<vmem>>, vector<2x16x64xf32>
    %60 = vector.shape_cast %59 : vector<2x16x64xf32> to vector<32x64xf32>
    %c0_54 = arith.constant 0 : index
    %c0_55 = arith.constant 0 : index
    %c0_56 = arith.constant 0 : index
    %61 = vector.load %arg3[%c0_54, %c0_55, %c0_56] : memref<3x64x64xf32, #tpu.memory_space<vmem>>, vector<1x64x64xf32>
    %62 = vector.shape_cast %61 : vector<1x64x64xf32> to vector<64x64xf32>
    %cst_57 = arith.constant dense<0.000000e+00> : vector<32x64xf32>
    %63 = tpu.matmul %60, %62, %cst_57 {dimension_numbers = #tpu.dot_dimension_numbers<[1], [0], [0], [1], [0, 0, 1, 1], [], []>} : vector<32x64xf32>, vector<64x64xf32>, vector<32x64xf32> -> vector<32x64xf32>
    %64 = arith.addf %58, %63 : vector<32x64xf32>
    %c0_58 = arith.constant 0 : index
    %c1_59 = arith.constant 1 : index
    %c0_60 = arith.constant 0 : index
    %65 = vector.load %arg13[%c0_58, %c1_59, %c0_60] : memref<2x18x64xf32, #tpu.memory_space<vmem>>, vector<2x16x64xf32>
    %66 = vector.shape_cast %65 : vector<2x16x64xf32> to vector<32x64xf32>
    %c1_61 = arith.constant 1 : index
    %c0_62 = arith.constant 0 : index
    %c0_63 = arith.constant 0 : index
    %67 = vector.load %arg3[%c1_61, %c0_62, %c0_63] : memref<3x64x64xf32, #tpu.memory_space<vmem>>, vector<1x64x64xf32>
    %68 = vector.shape_cast %67 : vector<1x64x64xf32> to vector<64x64xf32>
    %cst_64 = arith.constant dense<0.000000e+00> : vector<32x64xf32>
    %69 = tpu.matmul %66, %68, %cst_64 {dimension_numbers = #tpu.dot_dimension_numbers<[1], [0], [0], [1], [0, 0, 1, 1], [], []>} : vector<32x64xf32>, vector<64x64xf32>, vector<32x64xf32> -> vector<32x64xf32>
    %70 = arith.addf %64, %69 : vector<32x64xf32>
    %c0_65 = arith.constant 0 : index
    %c2_66 = arith.constant 2 : index
    %c0_67 = arith.constant 0 : index
    %71 = vector.load %arg13[%c0_65, %c2_66, %c0_67] : memref<2x18x64xf32, #tpu.memory_space<vmem>>, vector<2x16x64xf32>
    %72 = vector.shape_cast %71 : vector<2x16x64xf32> to vector<32x64xf32>
    %c2_68 = arith.constant 2 : index
    %c0_69 = arith.constant 0 : index
    %c0_70 = arith.constant 0 : index
    %73 = vector.load %arg3[%c2_68, %c0_69, %c0_70] : memref<3x64x64xf32, #tpu.memory_space<vmem>>, vector<1x64x64xf32>
    %74 = vector.shape_cast %73 : vector<1x64x64xf32> to vector<64x64xf32>
    %cst_71 = arith.constant dense<0.000000e+00> : vector<32x64xf32>
    %75 = tpu.matmul %72, %74, %cst_71 {dimension_numbers = #tpu.dot_dimension_numbers<[1], [0], [0], [1], [0, 0, 1, 1], [], []>} : vector<32x64xf32>, vector<64x64xf32>, vector<32x64xf32> -> vector<32x64xf32>
    %76 = arith.addf %70, %75 : vector<32x64xf32>
    %cst_72 = arith.constant dense<0.000000e+00> : vector<64xf32>
    %77 = vector.multi_reduction <add>, %76, %cst_72 [0] : vector<32x64xf32> to vector<64xf32>
    %78 = vector.shape_cast %77 : vector<64xf32> to vector<1x64xf32>
    %c0_73 = arith.constant 0 : index
    %c0_74 = arith.constant 0 : index
    %79 = vector.load %arg6[%c0_73, %c0_74] : memref<64x4xf32, #tpu.memory_space<vmem>>, vector<64x4xf32>
    %cst_75 = arith.constant dense<0.000000e+00> : vector<1x4xf32>
    %80 = tpu.matmul %78, %79, %cst_75 {dimension_numbers = #tpu.dot_dimension_numbers<[1], [0], [0], [1], [0, 0, 1, 1], [], []>} : vector<1x64xf32>, vector<64x4xf32>, vector<1x4xf32> -> vector<1x4xf32>
    %cst_76 = arith.constant 5.120000e+02 : f32
    %81 = vector.broadcast %cst_76 : f32 to vector<1x4xf32>
    %82 = arith.divf %80, %81 : vector<1x4xf32>
    %c0_77 = arith.constant 0 : index
    %c0_78 = arith.constant 0 : index
    %83 = vector.load %arg7[%c0_77, %c0_78] : memref<4x64xf32, #tpu.memory_space<vmem>>, vector<4x64xf32>
    %cst_79 = arith.constant dense<0.000000e+00> : vector<1x64xf32>
    %84 = tpu.matmul %82, %83, %cst_79 {dimension_numbers = #tpu.dot_dimension_numbers<[1], [0], [0], [1], [0, 0, 1, 1], [], []>} : vector<1x4xf32>, vector<4x64xf32>, vector<1x64xf32> -> vector<1x64xf32>
    %85 = vector.broadcast %84 : vector<1x64xf32> to vector<32x64xf32>
    %86 = arith.subf %76, %85 : vector<32x64xf32>
    %87 = arith.mulf %86, %86 : vector<32x64xf32>
    %cst_80 = arith.constant dense<0.000000e+00> : vector<64xf32>
    %88 = vector.multi_reduction <add>, %87, %cst_80 [0] : vector<32x64xf32> to vector<64xf32>
    %89 = vector.shape_cast %88 : vector<64xf32> to vector<1x64xf32>
    %c0_81 = arith.constant 0 : index
    %c0_82 = arith.constant 0 : index
    %90 = vector.load %arg6[%c0_81, %c0_82] : memref<64x4xf32, #tpu.memory_space<vmem>>, vector<64x4xf32>
    %cst_83 = arith.constant dense<0.000000e+00> : vector<1x4xf32>
    %91 = tpu.matmul %89, %90, %cst_83 {dimension_numbers = #tpu.dot_dimension_numbers<[1], [0], [0], [1], [0, 0, 1, 1], [], []>} : vector<1x64xf32>, vector<64x4xf32>, vector<1x4xf32> -> vector<1x4xf32>
    %cst_84 = arith.constant 5.120000e+02 : f32
    %92 = vector.broadcast %cst_84 : f32 to vector<1x4xf32>
    %93 = arith.divf %91, %92 : vector<1x4xf32>
    %c0_85 = arith.constant 0 : index
    %c0_86 = arith.constant 0 : index
    %94 = vector.load %arg10[%c0_85, %c0_86] : memref<1x4xf32, #tpu.memory_space<vmem>>, vector<1x4xf32>
    %cst_87 = arith.constant 9.99999974E-6 : f32
    %95 = vector.broadcast %cst_87 : f32 to vector<1x4xf32>
    %96 = arith.addf %93, %95 : vector<1x4xf32>
    %97 = math.rsqrt %96 : vector<1x4xf32>
    %98 = arith.mulf %94, %97 : vector<1x4xf32>
    %c0_88 = arith.constant 0 : index
    %c0_89 = arith.constant 0 : index
    %99 = vector.load %arg11[%c0_88, %c0_89] : memref<1x4xf32, #tpu.memory_space<vmem>>, vector<1x4xf32>
    %100 = arith.mulf %82, %98 : vector<1x4xf32>
    %101 = arith.subf %99, %100 : vector<1x4xf32>
    %c0_90 = arith.constant 0 : index
    %c0_91 = arith.constant 0 : index
    %102 = vector.load %arg7[%c0_90, %c0_91] : memref<4x64xf32, #tpu.memory_space<vmem>>, vector<4x64xf32>
    %cst_92 = arith.constant dense<0.000000e+00> : vector<1x64xf32>
    %103 = tpu.matmul %98, %102, %cst_92 {dimension_numbers = #tpu.dot_dimension_numbers<[1], [0], [0], [1], [0, 0, 1, 1], [], []>} : vector<1x4xf32>, vector<4x64xf32>, vector<1x64xf32> -> vector<1x64xf32>
    %104 = vector.broadcast %103 : vector<1x64xf32> to vector<32x64xf32>
    %105 = arith.mulf %76, %104 : vector<32x64xf32>
    %c0_93 = arith.constant 0 : index
    %c0_94 = arith.constant 0 : index
    %106 = vector.load %arg7[%c0_93, %c0_94] : memref<4x64xf32, #tpu.memory_space<vmem>>, vector<4x64xf32>
    %cst_95 = arith.constant dense<0.000000e+00> : vector<1x64xf32>
    %107 = tpu.matmul %101, %106, %cst_95 {dimension_numbers = #tpu.dot_dimension_numbers<[1], [0], [0], [1], [0, 0, 1, 1], [], []>} : vector<1x4xf32>, vector<4x64xf32>, vector<1x64xf32> -> vector<1x64xf32>
    %108 = vector.broadcast %107 : vector<1x64xf32> to vector<32x64xf32>
    %109 = arith.addf %105, %108 : vector<32x64xf32>
    %c0_96 = arith.constant 0 : index
    %c1_97 = arith.constant 1 : index
    %c0_98 = arith.constant 0 : index
    %110 = vector.load %arg1[%c0_96, %c1_97, %c0_98] : memref<2x18x64xf32, #tpu.memory_space<vmem>>, vector<2x16x64xf32>
    %111 = vector.shape_cast %110 : vector<2x16x64xf32> to vector<32x64xf32>
    %112 = arith.addf %109, %111 : vector<32x64xf32>
    %cst_99 = arith.constant 0.000000e+00 : f32
    %113 = vector.broadcast %cst_99 : f32 to vector<32x64xf32>
    %114 = arith.maximumf %112, %113 : vector<32x64xf32>
    %c0_100 = arith.constant 0 : index
    %c0_101 = arith.constant 0 : index
    %115 = vector.load %arg12[%c0_100, %c0_101] : memref<32x64xf32, #tpu.memory_space<vmem>>, vector<32x64xf32>
    tpu.vector_store %arg12[%c0_100, %c0_101], %114 {strides = array<i32>} : memref<32x64xf32, #tpu.memory_space<vmem>>, vector<32x64xf32>,
    return
  }
  func.func @transform_0(%arg0: i32) -> (i32, i32, i32) {
    %c0_i32 = arith.constant 0 : i32
    %c0_i32_0 = arith.constant 0 : i32
    %c0_i32_1 = arith.constant 0 : i32
    %c0_i32_2 = arith.constant 0 : i32
    return %c0_i32, %c0_i32_0, %c0_i32_1 : i32, i32, i32
  }
  func.func @transform_1(%arg0: i32) -> (i32, i32, i32) {
    %c0_i32 = arith.constant 0 : i32
    %c0_i32_0 = arith.constant 0 : i32
    %c0_i32_1 = arith.constant 0 : i32
    %c0_i32_2 = arith.constant 0 : i32
    return %c0_i32, %c0_i32_0, %c0_i32_1 : i32, i32, i32
  }
  func.func @transform_2(%arg0: i32) -> (i32, i32, i32) {
    %c0_i32 = arith.constant 0 : i32
    %c0_i32_0 = arith.constant 0 : i32
    %c0_i32_1 = arith.constant 0 : i32
    %c0_i32_2 = arith.constant 0 : i32
    return %c0_i32, %c0_i32_0, %c0_i32_1 : i32, i32, i32
  }
  func.func @transform_3(%arg0: i32) -> (i32, i32) {
    %c0_i32 = arith.constant 0 : i32
    %c0_i32_0 = arith.constant 0 : i32
    %c0_i32_1 = arith.constant 0 : i32
    return %c0_i32, %c0_i32_0 : i32, i32
  }
  func.func @transform_4(%arg0: i32) -> (i32, i32) {
    %c0_i32 = arith.constant 0 : i32
    %c0_i32_0 = arith.constant 0 : i32
    %c0_i32_1 = arith.constant 0 : i32
    return %c0_i32, %c0_i32_0 : i32, i32
  }
  func.func @transform_5(%arg0: i32) -> (i32, i32) {
    %c0_i32 = arith.constant 0 : i32
    %c0_i32_0 = arith.constant 0 : i32
    %c0_i32_1 = arith.constant 0 : i32
    return %c0_i32, %c0_i32_0 : i32, i32
  }
  func.func @transform_6(%arg0: i32) -> (i32, i32) {
    %c0_i32 = arith.constant 0 : i32
    %c0_i32_0 = arith.constant 0 : i32
    %c0_i32_1 = arith.constant 0 : i32
    return %c0_i32, %c0_i32_0 : i32, i32
  }
  func.func @transform_7(%arg0: i32) -> (i32, i32) {
    %c0_i32 = arith.constant 0 : i32
    %c0_i32_0 = arith.constant 0 : i32
    %c0_i32_1 = arith.constant 0 : i32
    return %c0_i32, %c0_i32_0 : i32, i32
  }
  func.func @transform_8(%arg0: i32) -> (i32, i32) {
    %c0_i32 = arith.constant 0 : i32
    %c0_i32_0 = arith.constant 0 : i32
    %c0_i32_1 = arith.constant 0 : i32
    return %c0_i32, %c0_i32_0 : i32, i32
  }
  func.func @transform_9(%arg0: i32) -> (i32, i32) {
    %c0_i32 = arith.constant 0 : i32
    %c0_i32_0 = arith.constant 0 : i32
    %c0_i32_1 = arith.constant 0 : i32
    return %c0_i32, %c0_i32_0 : i32, i32
  }
  func.func @transform_10(%arg0: i32) -> (i32, i32) {
    %c0_i32 = arith.constant 0 : i32
    %c0_i32_0 = arith.constant 0 : i32
    %c0_i32_1 = arith.constant 0 : i32
    return %c0_i32, %c0_i32_0 : i32, i32
  }
  func.func @transform_11(%arg0: i32) -> (i32, i32) {
    %c0_i32 = arith.constant 0 : i32
    %c0_i32_0 = arith.constant 0 : i32
    %c0_i32_1 = arith.constant 0 : i32
    return %c0_i32, %c0_i32_0 : i32, i32
  }
}

</mosaic_0001>

<bundles_post_ra>
// kernel: tpu_custom_call.1
= control target key start
LH: loop header
LB: loop body
LE: loop exit
PB: predicated region body
PF: predicated region fallthrough
CT: control target
= control target key end

     0   :  { %16 = vsyncpa [#allocation4], 0  ;;  %s2567_s0 = inlined_call_operand.vmem [shape: f32[2,18,64], index: 0, kind: input, shape index: {}]   ;;  %s2568_s1 = inlined_call_operand.vmem [shape: f32[3,64,64], index: 1, kind: input, shape index: {}]   ;;  %s2569_s2 = inlined_call_operand.hbm [shape: f32[3,64,64], index: 2, kind: input, shape index: {}]   ;;  %s2570_s3 = inlined_call_operand.vmem [shape: f32[64,4], index: 3, kind: input, shape index: {}]   ;;  %s2571_s4 = inlined_call_operand.vmem [shape: f32[4,64], index: 4, kind: input, shape index: {}]   ;;  %s2572_s5 = inlined_call_operand.vmem [shape: f32[64,4], index: 5, kind: input, shape index: {}]   ;;  %s2573_s6 = inlined_call_operand.vmem [shape: f32[4,64], index: 6, kind: input, shape index: {}]   ;;  %s2574_s7 = inlined_call_operand.vmem [shape: f32[1,4], index: 7, kind: input, shape index: {}]   ;;  %s2575_s8 = inlined_call_operand.vmem [shape: f32[1,4], index: 8, kind: input, shape index: {}]   ;;  %s2576_s9 = inlined_call_operand.vmem [shape: f32[1,4], index: 9, kind: input, shape index: {}]   ;;  %s2577_s10 = inlined_call_operand.vmem [shape: f32[1,4], index: 10, kind: input, shape index: {}]   ;;  %s2578_s11 = inlined_call_operand.hbm [shape: f32[32,64], index: 11, kind: output, shape index: {}]  }
   0x1   :  { %17 = vsyncpa [#allocation5], 0  ;;  %s2119_s17 = smov [#allocation3]  }
   0x2   :  { %s27_s18 = sshll.u32 %s2119_s17, 4  ;;  %s28_s18 = int_to_ptr.vmem [resolvable:$true] %s27_s18 }
   0x3   :  { %s2083_s19 = scalar_lea.vmem %s28_s18, 3072  ;;  %p2088_p1 = scmp.lt.s32.totalorder %s28_s18, %s28_s18 }
   0x4   :  { %p2084_p0 = scmp.ne.s32.totalorder %s28_s18, %s2083_s19  ;;  %p2089_p2 = scmp.lt.s32.totalorder %s2083_s19, %s2083_s19 }
   0x6   :  { %p2090_p3 = por %p2089_p2, %p2088_p1 }
   0x8   :  { %p2091_p4 = pnand %p2090_p3, %p2084_p0 }
   0xa   :  { %2094 = shalt.err (!%p2091_p4)
}
   0xb   :  { %s2120_s20 = smov 128   ;;  %s2121_s21 = smov 8  }
   0xc   :  { %33 = dma.hbm_to_vmem [thread:$0]  %s2569_s2, 3072, %s28_s18, [#allocation4], %s2120_s20, %s2120_s20, %s2121_s21  }
   0xd   :  { %2115 = dma.done.wait [#allocation4], 3072  }
   0xe   :  { %2116 = vsyncadd [#allocation4], 4294964224  ;;  %v1658_v0 = vld [vmem:[%s2568_s1 + $0x78] sm:$0xff]  ;;  %v1657_v2 = vld [vmem:[%s2568_s1 + $0x70] sm:$0xff]  ;;  %vm78_vm0 = vcmask 523264   ;;  %v2122_v36 = vmov 0.0  }
   0xf   :  { %v64_v1 = vld [vmem:[%s2568_s1 + $0x38] sm:$0xff]  ;;  %1827 = vmatprep.subr.mxu0 %v1658_v0  ;;  %v63_v3 = vld [vmem:[%s2568_s1 + $0x30] sm:$0xff]  ;;  %v1656_v4 = vld [vmem:[%s2568_s1 + $0x68] sm:$0xff]  ;;  %834 = vst.msk [vmem:[#allocation2] sm:$0xff] %vm78_vm0, %v2122_v36  ;;  %vm2123_vm1 = vmmov 0   ;;  %vm488_vm2 = vcmask 1043456  }
  0x10   :  { %1849 = vmatprep.subr.mxu1 %v64_v1  ;;  %1828 = vmatpush3.msra.mxu0 %v1658_v0  ;;  %v62_v5 = vld [vmem:[%s2568_s1 + $0x28] sm:$0xff]  ;;  %v1655_v6 = vld [vmem:[%s2568_s1 + $0x60] sm:$0xff]  ;;  %v1654_v8 = vld [vmem:[%s2568_s1 + $0x58] sm:$0xff]  ;;  %835 = vst.msk [vmem:[#allocation2 + $0x8] sm:$0xff] %vm78_vm0, %v2122_v36  ;;  %vm484_vm3 = vcmask 31744   ;;  %vm836_vm4 = vcmask 517120  }
  0x11   :  { %1850 = vmatpush3.msra.mxu1 %v64_v1  ;;  %1829 = vmatprep.subr.mxu0 %v1657_v2  ;;  %v61_v7 = vld [vmem:[%s2568_s1 + $0x20] sm:$0xff]  ;;  %v60_v9 = vld [vmem:[%s2568_s1 + $0x18] sm:$0xff]  ;;  %v1653_v10 = vld [vmem:[%s2568_s1 + $0x50] sm:$0xff]  ;;  %838 = vst.msk [vmem:[#allocation2 + $0x18] sm:$0xff] %vm78_vm0, %v2122_v36 }
  0x12   :  { %1851 = vmatprep.subr.mxu1 %v63_v3  ;;  %1830 = vmatpush3.msra.mxu0 %v1657_v2  ;;  %v59_v11 = vld [vmem:[%s2568_s1 + $0x10] sm:$0xff]  ;;  %v1652_v12 = vld [vmem:[%s2568_s1 + $0x48] sm:$0xff]  ;;  %v1651_v14 = vld [vmem:[%s2568_s1 + $0x40] sm:$0xff]  ;;  %839 = vst.msk [vmem:[#allocation2 + $0x20] sm:$0xff] %vm78_vm0, %v2122_v36 }
  0x13   :  { %1852 = vmatpush3.msra.mxu1 %v63_v3  ;;  %1831 = vmatprep.subr.mxu0 %v1656_v4  ;;  %v58_v13 = vld [vmem:[%s2568_s1 + $0x8] sm:$0xff]  ;;  %v57_v15 = vld [vmem:[%s2568_s1] sm:$0xff]  ;;  %v1674_v20 = vld [vmem:[%s2568_s1 + $0xb8] sm:$0xff]  ;;  %837 = vst.msk [vmem:[#allocation2 + $0x10] sm:$0x3] %vm836_vm4, %v2122_v36 }
  0x14   :  { %1853 = vmatprep.subr.mxu1 %v62_v5  ;;  %1832 = vmatpush3.msra.mxu0 %v1656_v4  ;;  %v2242_v16 = vld [vmem:[%s2567_s0 + $0x1] sm:$0xff]  ;;  %v2250_v18 = vld [vmem:[%s2567_s0 + $0x9] sm:$0xff]  ;;  %v2263_v21 = vld [vmem:[%s2567_s0 + $0x19] sm:$0xff]  ;;  %840 = vst.msk [vmem:[#allocation2 + $0x28] sm:$0x3] %vm836_vm4, %v2122_v36 }
  0x15   :  { %1854 = vmatpush3.msra.mxu1 %v62_v5  ;;  %1833 = vmatprep.subr.mxu0 %v1655_v6  ;;  %v53_v17 = vld [vmem:[%s2567_s0] sm:$0xff]  ;;  %v54_v19 = vld [vmem:[%s2567_s0 + $0x8] sm:$0xff]  ;;  %v55_v22 = vld [vmem:[%s2567_s0 + $0x18] sm:$0xff] }
  0x16   :  { %1855 = vmatprep.subr.mxu1 %v61_v7  ;;  %1834 = vmatpush3.msra.mxu0 %v1655_v6  ;;  %v1673_v23 = vld [vmem:[%s2568_s1 + $0xb0] sm:$0xff]  ;;  %v56_v24 = vld [vmem:[%s2567_s0 + $0x20] sm:$0xff]  ;;  %v1672_v25 = vld [vmem:[%s2568_s1 + $0xa8] sm:$0xff] }
  0x17   :  { %1856 = vmatpush3.msra.mxu1 %v61_v7  ;;  %1835 = vmatprep.subr.mxu0 %v1654_v8  ;;  %v2287_v26 = vld [vmem:[%s2567_s0 + $0x21] sm:$0xff]  ;;  %v1670_v29 = vld [vmem:[%s2568_s1 + $0x98] sm:$0xff]  ;;  %v1669_v30 = vld [vmem:[%s2568_s1 + $0x90] sm:$0xff] }
  0x18   :  { %1857 = vmatprep.subr.mxu1 %v60_v9  ;;  %1836 = vmatpush3.msra.mxu0 %v1654_v8  ;;  %v273_v27 = vld [vmem:[%s2567_s0 + $0x2] sm:$0xff]  ;;  %v274_v33 = vld [vmem:[%s2567_s0 + $0xa] sm:$0xff]  ;;  %v275_v34 = vld [vmem:[%s2567_s0 + $0x1a] sm:$0xff] }
  0x19   :  { %1858 = vmatpush3.msra.mxu1 %v60_v9  ;;  %1837 = vmatprep.subr.mxu0 %v1653_v10  ;;  %v1671_v28 = vld [vmem:[%s2568_s1 + $0xa0] sm:$0xff]  ;;  %v1668_v31 = vld [vmem:[%s2568_s1 + $0x88] sm:$0xff]  ;;  %v407_v37 = vld [vmem:[%s2570_s3 + $0x38] sm:$0xff] }
  0x1a   :  { %1859 = vmatprep.subr.mxu1 %v59_v11  ;;  %1838 = vmatpush3.msra.mxu0 %v1653_v10  ;;  %v1667_v32 = vld [vmem:[%s2568_s1 + $0x80] sm:$0xff]  ;;  %v406_v38 = vld [vmem:[%s2570_s3 + $0x30] sm:$0xff]  ;;  %v405_v39 = vld [vmem:[%s2570_s3 + $0x28] sm:$0xff] }
  0x1b   :  { %1860 = vmatpush3.msra.mxu1 %v59_v11  ;;  %1839 = vmatprep.subr.mxu0 %v1652_v12  ;;  %v276_v35 = vld [vmem:[%s2567_s0 + $0x22] sm:$0xff]  ;;  %v403_v41 = vld [vmem:[%s2570_s3 + $0x18] sm:$0xff]  ;;  %v402_v42 = vld [vmem:[%s2570_s3 + $0x10] sm:$0xff] }
  0x1c   :  { %1861 = vmatprep.subr.mxu1 %v58_v13  ;;  %1840 = vmatpush3.msra.mxu0 %v1652_v12  ;;  %v404_v40 = vld [vmem:[%s2570_s3 + $0x20] sm:$0xff]  ;;  %v401_v43 = vld [vmem:[%s2570_s3 + $0x8] sm:$0xff] }
  0x1d   :  { %1862 = vmatpush3.msra.mxu1 %v58_v13  ;;  %1841 = vmatprep.subr.mxu0 %v1651_v14  ;;  %v400_v44 = vld [vmem:[%s2570_s3] sm:$0xff] }
  0x1e   :  { %1863 = vmatprep.subr.mxu1 %v57_v15  ;;  %1842 = vmatpush3.msra.mxu0 %v1651_v14  ;;  %v483_v14 = vld [vmem:[%s2571_s4] sm:$0xf] }
  0x1f   :  { %1843 = vmatprep.mubr.msk.f32.mxu0 %vm78_vm0, %v2242_v16  ;;  %1864 = vmatpush3.msra.mxu1 %v57_v15 }
  0x20   :  { %1865 = vmatprep.mubr.msk.f32.mxu1 %vm78_vm0, %v53_v17  ;;  %1844 = vmatmul.mubr.msk.f32.vlgmr.msra.gmra.mxu0 %vm78_vm0, %v2250_v18 }
  0x21   :  { %1866 = vmatmul.mubr.msk.f32.vlgmr.msra.gmra.mxu1 %vm78_vm0, %v54_v19  ;;  %1871 = vmatprep.subr.mxu0 %v1674_v20 }
  0x22   :  { %1846 = vmatprep.mubr.msk.f32.mxu0 %vm78_vm0, %v2263_v21  ;;  %1872 = vmatpush3.msra.mxu0 %v1674_v20  ;;  %v562_v20 = vlaneseq }
  0x23   :  { %1868 = vmatprep.mubr.msk.f32.mxu1 %vm78_vm0, %v55_v22  ;;  %1873 = vmatprep.subr.mxu0 %v1673_v23 }
  0x24   :  { %1874 = vmatpush3.msra.mxu0 %v1673_v23  ;;  %1893 = vmatprep.subr.mxu1 %v2122_v36  ;;  %v563_v22 = vshrl.u32 %v562_v20, 7 }
  0x25   :  { %1869 = vmatmul.mubr.msk.f32.gmra.mxu1 %vm78_vm0, %v56_v24  ;;  %1875 = vmatprep.subr.mxu0 %v1672_v25 }
  0x26   :  { %1847 = vmatmul.mubr.msk.f32.gmra.mxu0 %vm78_vm0, %v2287_v26  ;;  %1894 = vmatpush3.msra.mxu1 %v407_v37  ;;  %v2405_v23 = vsub.s32 0, %v563_v22 }
  0x27   :  { %1876 = vmatpush3.msra.mxu0 %v1672_v25  ;;  %1887 = vmatprep.mubr.msk.f32.mxu0 %vm78_vm0, %v273_v27 }
  0x28   :  { %1877 = vmatprep.subr.mxu0 %v1671_v28  ;;  %1895 = vmatprep.subr.mxu1 %v2122_v36 }
  0x29   :  { %1878 = vmatpush3.msra.mxu0 %v1671_v28  ;;  %1896 = vmatpush3.msra.mxu1 %v406_v38 }
  0x2a   :  { %1879 = vmatprep.subr.mxu0 %v1670_v29  ;;  %1897 = vmatprep.subr.mxu1 %v2122_v36 }
  0x2b   :  { %1880 = vmatpush3.msra.mxu0 %v1670_v29  ;;  %1898 = vmatpush3.msra.mxu1 %v405_v39 }
  0x2c   :  { %1881 = vmatprep.subr.mxu0 %v1669_v30  ;;  %1899 = vmatprep.subr.mxu1 %v2122_v36 }
  0x2d   :  { %1882 = vmatpush3.msra.mxu0 %v1669_v30  ;;  %1900 = vmatpush3.msra.mxu1 %v404_v40 }
  0x2e   :  { %1883 = vmatprep.subr.mxu0 %v1668_v31  ;;  %1901 = vmatprep.subr.mxu1 %v2122_v36 }
  0x2f   :  { %1884 = vmatpush3.msra.mxu0 %v1668_v31  ;;  %1902 = vmatpush3.msra.mxu1 %v403_v41 }
  0x30   :  { %1885 = vmatprep.subr.mxu0 %v1667_v32  ;;  %1903 = vmatprep.subr.mxu1 %v2122_v36 }
  0x31   :  { %1886 = vmatpush3.msra.mxu0 %v1667_v32  ;;  %1904 = vmatpush3.msra.mxu1 %v402_v42 }
  0x32   :  { %1888 = vmatmul.mubr.msk.f32.vlgmr.msra.gmra.mxu0 %vm78_vm0, %v274_v33  ;;  %1917 = vmatprep.subr.mxu0 %v2122_v36 }
  0x33   :  { %1890 = vmatprep.mubr.msk.f32.mxu0 %vm78_vm0, %v275_v34  ;;  %1918 = vmatpush3.msra.mxu0 %v407_v37 }
  0x34   :  { %1919 = vmatprep.subr.mxu0 %v2122_v36  ;;  %1905 = vmatprep.subr.mxu1 %v2122_v36 }
  0x35   :  { %1920 = vmatpush3.msra.mxu0 %v406_v38  ;;  %1906 = vmatpush3.msra.mxu1 %v401_v43 }
  0x36   :  { %1891 = vmatmul.mubr.msk.f32.gmra.mxu0 %vm78_vm0, %v276_v35  ;;  %1921 = vmatprep.subr.mxu0 %v2122_v36 }
  0x37   :  { %1922 = vmatpush3.msra.mxu0 %v405_v39  ;;  %1907 = vmatprep.subr.mxu1 %v2122_v36 }
  0x38   :  { %1923 = vmatprep.subr.mxu0 %v2122_v36  ;;  %1908 = vmatpush3.msra.mxu1 %v400_v44 }
  0x39   :  { %1924 = vmatpush3.msra.mxu0 %v404_v40  ;;  %1909 = vmatprep.mubr.msk.f32.mxu1 %vm2123_vm1, %v2122_v36 }
  0x3a   :  { %1925 = vmatprep.subr.mxu0 %v2122_v36  ;;  %1912 = vmatprep.subr.mxu1 %v2122_v36 }
  0x3b   :  { %1926 = vmatpush3.msra.mxu0 %v403_v41  ;;  %1933 = vmatprep.mubr.msk.f32.mxu0 %vm2123_vm1, %v2122_v36 }
  0x3c   :  { %1927 = vmatprep.subr.mxu0 %v2122_v36 }
  0x3d   :  { %1928 = vmatpush3.msra.mxu0 %v402_v42 }
  0x3e   :  { %1929 = vmatprep.subr.mxu0 %v2122_v36 }
  0x3f   :  { %1930 = vmatpush3.msra.mxu0 %v401_v43 }
  0x40   :  { %1931 = vmatprep.subr.mxu0 %v2122_v36 }
  0x41   :  { %1932 = vmatpush3.msra.mxu0 %v400_v44 }
  0xe0   :  { %v1845_v45 = vpop.f32.mrf.mxu0 }
  0xe1   :  { %v1867_v46 = vpop.f32.mrf.mxu1 }
  0xe2   :  { %v157_v47 = vpop.f32.mrf.mxu0  ;;  %v260_v53 = vadd.f32 %v1867_v46, %v1845_v45 }
  0xe3   :  { %v254_v49 = vpop.f32.mrf.mxu1 }
  0xe4   :  { %v255_v54 = vadd.f32 %v254_v49, %v157_v47 }
  0xe5   :  { %v1870_v50 = vpop.f32.mrf.mxu1 }
  0xe6   :  { %v1848_v48 = vpop.f32.mrf.mxu0 }
  0xe7   :  { %v264_v55 = vpop.f32.mrf.mxu1  ;;  %v270_v60 = vadd.f32 %v1870_v50, %v1848_v48 }
  0xe8   :  { %v167_v51 = vpop.f32.mrf.mxu0 }
  0xe9   :  { %v265_v61 = vadd.f32 %v264_v55, %v167_v51 }
  0xf2   :  { %v1889_v52 = vpop.f32.mrf.mxu0 }
  0xf3   :  { %v2376_v57 = vadd.f32 %v1889_v52, %v260_v53 }
  0xf4   :  { %v364_v56 = vpop.f32.mrf.mxu0 }
  0xf5   :  { %v2378_v58 = vadd.f32 %v364_v56, %v255_v54  ;;  %v388_v0 = vsel %vm78_vm0, %v2376_v57, 0.0  ;;  %v661_v54 = vld [vmem:[%s2574_s7] sm:$0x1] }
  0xf6   :  { %v1892_v59 = vpop.f32.mrf.mxu0 }
  0xf7   :  { %v387_v62 = vsel %vm78_vm0, %v2378_v58, 0.0  ;;  %v2384_v1 = vadd.f32 %v1892_v59, %v270_v60  ;;  %v665_v59 = vld [vmem:[%s2575_s8] sm:$0x1] }
  0xf8   :  { %v374_v63 = vpop.f32.mrf.mxu0  ;;  %v389_v3 = vadd.f32 %v388_v0, %v387_v62  ;;  %v869_v62 = vld [vmem:[#allocation3 + $0x78] sm:$0xff]  ;;  %v868_v0 = vld [vmem:[#allocation3 + $0x70] sm:$0xff] }
  0xf9   :  { %v2386_v2 = vadd.f32 %v374_v63, %v265_v61  ;;  %v392_v6 = vsel %vm78_vm0, %v2384_v1, 0.0  ;;  %v856_v63 = vld [vmem:[#allocation3 + $0x38] sm:$0xff] }
  0xfa   :  { %1968 = vmatprep.subr.mxu0 %v856_v63 }
  0xfb   :  { %v390_v4 = vsel %vm78_vm0, %v2386_v2, 0.0 }
  0xfc   :  { %v391_v5 = vadd.f32 %v390_v4, %v389_v3  ;;  %v855_v3 = vld [vmem:[#allocation3 + $0x30] sm:$0xff]  ;;  %v867_v4 = vld [vmem:[#allocation3 + $0x68] sm:$0xff] }
  0xfe   :  { %v393_v7 = vadd.f32 %v392_v6, %v391_v5  ;;  %v854_v5 = vld [vmem:[#allocation3 + $0x28] sm:$0xff]  ;;  %v866_v6 = vld [vmem:[#allocation3 + $0x60] sm:$0xff] }
 0x100   :  { %v394_v8 = vrot.slane %v393_v7, 4 }
 0x102   :  { %v395_v9 = vadd.f32 %v394_v8, %v393_v7  ;;  %v853_v7 = vld [vmem:[#allocation3 + $0x20] sm:$0xff]  ;;  %v865_v8 = vld [vmem:[#allocation3 + $0x58] sm:$0xff] }
 0x104   :  { %v396_v10 = vrot.slane %v395_v9, 2 }
 0x106   :  { %v397_v11 = vadd.f32 %v396_v10, %v395_v9  ;;  %v852_v9 = vld [vmem:[#allocation3 + $0x18] sm:$0xff]  ;;  %v864_v10 = vld [vmem:[#allocation3 + $0x50] sm:$0xff] }
 0x108   :  { %v398_v12 = vrot.slane %v397_v11, 1 }
 0x10a   :  { %v399_v13 = vadd.f32 %v398_v12, %v397_v11  ;;  %v851_v11 = vld [vmem:[#allocation3 + $0x10] sm:$0xff]  ;;  %v863_v12 = vld [vmem:[#allocation3 + $0x48] sm:$0xff] }
 0x10c   :  { %1910 = vmatmul.mubr.msk.f32.vlgmr.msra.gmra.mxu1 %vm78_vm0, %v399_v13  ;;  %v850_v13 = vld [vmem:[#allocation3 + $0x8] sm:$0xff] }
 0x10d   :  { %1913 = vmatpush3.msk.msra.mxu1 %vm488_vm2, %v483_v14  ;;  %1914 = vmatprep.mubr.msk.f32.mxu1 %vm2123_vm1, %v2122_v36 }
 0x10e   :  { %1936 = vmatprep.subr.mxu1 %v2122_v36 }
 0x1cc   :  { %v477_v15 = vpop.f32.mrf.mxu1 }
 0x1cd   :  { %v482_v17 = vmul.f32 0.001953125, %v477_v15  ;;  %v849_v15 = vld [vmem:[#allocation3] sm:$0xff] }
 0x1ce   :  { %v1911_v19 = vpop.f32.mrf.mxu1 }
 0x1cf   :  { %1915 = vmatmul.mubr.msk.f32.vlgmr.msra.gmra.mxu1 %vm484_vm3, %v482_v17 }
 0x1d0   :  { %1937 = vmatpush3.msk.msra.mxu1 %vm488_vm2, %v483_v14  ;;  %1938 = vmatprep.mubr.msk.f32.mxu1 %vm2123_vm1, %v2122_v36 }
 0x1d1   :  { %1941 = vmatprep.subr.mxu1 %v2122_v36 }
 0x28f   :  { %v558_v24 = vpop.f32.mrf.mxu1 }
 0x290   :  { %v565_v25 = vrot.slane %v558_v24, %v2405_v23 }
 0x291   :  { %v1916_v27 = vpop.f32.mrf.mxu1 }
 0x292   :  { %v566_v28 = vsub.f32 %v2378_v58, %v565_v25  ;;  %v567_v29 = vsub.f32 %v2376_v57, %v565_v25  ;;  %v568_v30 = vsub.f32 %v2386_v2, %v565_v25  ;;  %v569_v31 = vsub.f32 %v2384_v1, %v565_v25 }
 0x294   :  { %v570_v32 = vmul.f32 %v566_v28, %v566_v28  ;;  %v571_v33 = vmul.f32 %v567_v29, %v567_v29  ;;  %v572_v34 = vmul.f32 %v568_v30, %v568_v30  ;;  %v573_v35 = vmul.f32 %v569_v31, %v569_v31 }
 0x296   :  { %v574_v37 = vsel %vm78_vm0, %v570_v32, 0.0  ;;  %v575_v38 = vsel %vm78_vm0, %v571_v33, 0.0  ;;  %v577_v40 = vsel %vm78_vm0, %v572_v34, 0.0  ;;  %v579_v42 = vsel %vm78_vm0, %v573_v35, 0.0 }
 0x297   :  { %v576_v39 = vadd.f32 %v575_v38, %v574_v37 }
 0x299   :  { %v578_v41 = vadd.f32 %v577_v40, %v576_v39 }
 0x29b   :  { %v580_v43 = vadd.f32 %v579_v42, %v578_v41  ;;  %v1075_v41 = vld [vmem:[#allocation3 + $0xb0] sm:$0xff] }
 0x29d   :  { %v581_v44 = vrot.slane %v580_v43, 4 }
 0x29f   :  { %v582_v45 = vadd.f32 %v581_v44, %v580_v43  ;;  %v1074_v44 = vld [vmem:[#allocation3 + $0xa8] sm:$0xff] }
 0x2a1   :  { %v583_v46 = vrot.slane %v582_v45, 2 }
 0x2a3   :  { %v584_v47 = vadd.f32 %v583_v46, %v582_v45  ;;  %v1073_v46 = vld [vmem:[#allocation3 + $0xa0] sm:$0xff] }
 0x2a5   :  { %v585_v48 = vrot.slane %v584_v47, 1 }
 0x2a7   :  { %v586_v49 = vadd.f32 %v585_v48, %v584_v47 }
 0x2a9   :  { %1934 = vmatmul.mubr.msk.f32.vlgmr.msra.gmra.mxu0 %vm78_vm0, %v586_v49  ;;  %v1072_v49 = vld [vmem:[#allocation3 + $0x98] sm:$0xff] }
 0x2aa   :  { %1969 = vmatpush3.msra.mxu0 %v856_v63  ;;  %v1193_v63 = vld [vmem:[%s2572_s5 + $0x10] sm:$0xff] }
 0x2ab   :  { %1970 = vmatprep.subr.mxu0 %v855_v3 }
 0x2ac   :  { %1971 = vmatpush3.msra.mxu0 %v855_v3  ;;  %v1191_v3 = vld [vmem:[%s2572_s5] sm:$0xff] }
 0x2ad   :  { %1972 = vmatprep.subr.mxu0 %v854_v5 }
 0x2ae   :  { %1973 = vmatpush3.msra.mxu0 %v854_v5 }
 0x2af   :  { %1974 = vmatprep.subr.mxu0 %v853_v7 }
 0x2b0   :  { %1975 = vmatpush3.msra.mxu0 %v853_v7 }
 0x2b1   :  { %1976 = vmatprep.subr.mxu0 %v852_v9 }
 0x2b2   :  { %1977 = vmatpush3.msra.mxu0 %v852_v9 }
 0x2b3   :  { %1978 = vmatprep.subr.mxu0 %v851_v11 }
 0x2b4   :  { %1979 = vmatpush3.msra.mxu0 %v851_v11 }
 0x2b5   :  { %1980 = vmatprep.subr.mxu0 %v850_v13 }
 0x2b6   :  { %1981 = vmatpush3.msra.mxu0 %v850_v13 }
 0x2b7   :  { %1982 = vmatprep.subr.mxu0 %v849_v15 }
 0x2b8   :  { %1983 = vmatpush3.msra.mxu0 %v849_v15 }
 0x2b9   :  { %2012 = vmatprep.subr.mxu0 %v2122_v36 }
 0x369   :  { %v656_v50 = vpop.f32.mrf.mxu0 }
 0x36a   :  { %v660_v51 = vmul.f32 0.001953125, %v656_v50  ;;  %v1071_v50 = vld [vmem:[#allocation3 + $0x90] sm:$0xff] }
 0x36b   :  { %v1935_v52 = vpop.f32.mrf.mxu0 }
 0x36c   :  { %v662_v53 = vadd.f32 1e-05, %v660_v51  ;;  %v1070_v51 = vld [vmem:[#allocation3 + $0x88] sm:$0xff]  ;;  %v1069_v52 = vld [vmem:[#allocation3 + $0x80] sm:$0xff] }
 0x36e   :  { %2071 = vrsqrt.f32 %v662_v53 }
 0x37b   :  { %v2072_v55 = vpop.eup %2071 }
 0x37c   :  { %v664_v56 = vmul.f32 %v2072_v55, %v661_v54 }
 0x37e   :  { %1939 = vmatmul.mubr.msk.f32.vlgmr.msra.gmra.mxu1 %vm484_vm3, %v664_v56  ;;  %v666_v60 = vmul.f32 %v664_v56, %v482_v17  ;;  %v1076_v17 = vld [vmem:[#allocation3 + $0xb8] sm:$0xff]  ;;  %v1198_v56 = vld [vmem:[%s2572_s5 + $0x38] sm:$0xff] }
 0x37f   :  { %1942 = vmatpush3.msk.msra.mxu1 %vm488_vm2, %v483_v14  ;;  %1943 = vmatprep.mubr.msk.f32.mxu1 %vm2123_vm1, %v2122_v36  ;;  %v862_v14 = vld [vmem:[#allocation3 + $0x40] sm:$0xff] }
 0x380   :  { %v667_v61 = vsub.f32 %v665_v59, %v666_v60  ;;  %1946 = vmatprep.subr.mxu1 %v869_v62  ;;  %v1197_v59 = vld [vmem:[%s2572_s5 + $0x30] sm:$0xff]  ;;  %v1196_v60 = vld [vmem:[%s2572_s5 + $0x28] sm:$0xff] }
 0x382   :  { %1944 = vmatmul.mubr.msk.f32.vlgmr.msra.gmra.mxu1 %vm484_vm3, %v667_v61  ;;  %v1195_v61 = vld [vmem:[%s2572_s5 + $0x20] sm:$0xff] }
 0x383   :  { %1947 = vmatpush3.msra.mxu1 %v869_v62  ;;  %v1194_v62 = vld [vmem:[%s2572_s5 + $0x18] sm:$0xff] }
 0x384   :  { %1948 = vmatprep.subr.mxu1 %v868_v0 }
 0x385   :  { %1949 = vmatpush3.msra.mxu1 %v868_v0  ;;  %v1192_v0 = vld [vmem:[%s2572_s5 + $0x8] sm:$0xff] }
 0x386   :  { %1950 = vmatprep.subr.mxu1 %v867_v4 }
 0x387   :  { %1951 = vmatpush3.msra.mxu1 %v867_v4 }
 0x388   :  { %1952 = vmatprep.subr.mxu1 %v866_v6 }
 0x389   :  { %1953 = vmatpush3.msra.mxu1 %v866_v6 }
 0x38a   :  { %1954 = vmatprep.subr.mxu1 %v865_v8 }
 0x38b   :  { %1955 = vmatpush3.msra.mxu1 %v865_v8 }
 0x38c   :  { %1956 = vmatprep.subr.mxu1 %v864_v10 }
 0x38d   :  { %1957 = vmatpush3.msra.mxu1 %v864_v10 }
 0x38e   :  { %1958 = vmatprep.subr.mxu1 %v863_v12 }
 0x38f   :  { %1959 = vmatpush3.msra.mxu1 %v863_v12 }
 0x390   :  { %1960 = vmatprep.subr.mxu1 %v862_v14 }
 0x391   :  { %1961 = vmatpush3.msra.mxu1 %v862_v14 }
 0x392   :  { %1990 = vmatprep.subr.mxu1 %v1076_v17 }
 0x43e   :  { %v737_v19 = vpop.f32.mrf.mxu1 }
 0x43f   :  { %v744_v20 = vrot.slane %v737_v19, %v2405_v23 }
 0x440   :  { %v1940_v22 = vpop.f32.mrf.mxu1 }
 0x441   :  { %v745_v24 = vmul.f32 %v744_v20, %v2378_v58  ;;  %v746_v27 = vmul.f32 %v744_v20, %v2376_v57  ;;  %v747_v28 = vmul.f32 %v744_v20, %v2386_v2  ;;  %v748_v29 = vmul.f32 %v744_v20, %v2384_v1 }
 0x442   :  { %v818_v25 = vpop.f32.mrf.mxu1 }
 0x443   :  { %v825_v30 = vrot.slane %v818_v25, %v2405_v23 }
 0x444   :  { %v1945_v31 = vpop.f32.mrf.mxu1 }
 0x445   :  { %v826_v32 = vadd.f32 %v825_v30, %v745_v24  ;;  %v827_v33 = vadd.f32 %v825_v30, %v746_v27  ;;  %v828_v34 = vadd.f32 %v825_v30, %v747_v28  ;;  %v829_v35 = vadd.f32 %v825_v30, %v748_v29 }
 0x447   :  { %v830_v37 = vmax.f32 %v826_v32, 0.0  ;;  %v831_v38 = vmax.f32 %v827_v33, 0.0  ;;  %v832_v39 = vmax.f32 %v828_v34, 0.0  ;;  %v833_v40 = vmax.f32 %v829_v35, 0.0 }
 0x449   :  { %841 = vst.msk [vmem:[#allocation2 + $0x1] sm:$0xff] %vm78_vm0, %v830_v37  ;;  %842 = vst.msk [vmem:[#allocation2 + $0x9] sm:$0xff] %vm78_vm0, %v831_v38 }
 0x44a   :  { %843 = vst.msk [vmem:[#allocation2 + $0x19] sm:$0xff] %vm78_vm0, %v832_v39  ;;  %844 = vst.msk [vmem:[#allocation2 + $0x21] sm:$0xff] %vm78_vm0, %v833_v40 }
 0x450   :  { %v857_v57 = vld [vmem:[#allocation2 + $0x1] sm:$0xff]  ;;  %v858_v1 = vld [vmem:[#allocation2 + $0x9] sm:$0xff] }
 0x451   :  { %v845_v58 = vld [vmem:[#allocation2] sm:$0xff]  ;;  %1962 = vmatprep.mubr.msk.f32.mxu1 %vm78_vm0, %v857_v57  ;;  %v846_v2 = vld [vmem:[#allocation2 + $0x8] sm:$0xff]  ;;  %v847_v43 = vld [vmem:[#allocation2 + $0x18] sm:$0xff] }
 0x452   :  { %1984 = vmatprep.mubr.msk.f32.mxu0 %vm78_vm0, %v845_v58  ;;  %1963 = vmatmul.mubr.msk.f32.vlgmr.msra.gmra.mxu1 %vm78_vm0, %v858_v1  ;;  %v859_v42 = vld [vmem:[#allocation2 + $0x19] sm:$0xff]  ;;  %v860_v45 = vld [vmem:[#allocation2 + $0x21] sm:$0xff]  ;;  %v1065_v53 = vld [vmem:[#allocation2 + $0xa] sm:$0xff] }
 0x453   :  { %1985 = vmatmul.mubr.msk.f32.vlgmr.msra.gmra.mxu0 %vm78_vm0, %v846_v2  ;;  %1991 = vmatpush3.msra.mxu1 %v1076_v17  ;;  %v848_v47 = vld [vmem:[#allocation2 + $0x20] sm:$0xff] }
 0x454   :  { %1965 = vmatprep.mubr.msk.f32.mxu1 %vm78_vm0, %v859_v42  ;;  %1987 = vmatprep.mubr.msk.f32.mxu0 %vm78_vm0, %v847_v43  ;;  %v1064_v48 = vld [vmem:[#allocation2 + $0x2] sm:$0xff]  ;;  %v1066_v54 = vld [vmem:[#allocation2 + $0x1a] sm:$0xff] }
 0x455   :  { %1992 = vmatprep.subr.mxu1 %v1075_v41  ;;  %v1067_v55 = vld [vmem:[#allocation2 + $0x22] sm:$0xff]  ;;  %2013 = vmatpush3.msra.mxu0 %v1198_v56 }
 0x456   :  { %1993 = vmatpush3.msra.mxu1 %v1075_v41  ;;  %2014 = vmatprep.subr.mxu0 %v2122_v36  ;;  %v1273_v1 = vld [vmem:[%s2573_s6] sm:$0xf] }
 0x457   :  { %1994 = vmatprep.subr.mxu1 %v1074_v44  ;;  %1966 = vmatmul.mubr.msk.f32.gmra.mxu1 %vm78_vm0, %v860_v45 }
 0x458   :  { %1988 = vmatmul.mubr.msk.f32.gmra.mxu0 %vm78_vm0, %v848_v47  ;;  %1995 = vmatpush3.msra.mxu1 %v1074_v44 }
 0x459   :  { %1996 = vmatprep.subr.mxu1 %v1073_v46  ;;  %2006 = vmatprep.mubr.msk.f32.mxu1 %vm78_vm0, %v1064_v48 }
 0x45a   :  { %1997 = vmatpush3.msra.mxu1 %v1073_v46  ;;  %2028 = vmatprep.mubr.msk.f32.mxu0 %vm2123_vm1, %v2122_v36 }
 0x45b   :  { %1998 = vmatprep.subr.mxu1 %v1072_v49  ;;  %2015 = vmatpush3.msra.mxu0 %v1197_v59 }
 0x45c   :  { %1999 = vmatpush3.msra.mxu1 %v1072_v49  ;;  %2016 = vmatprep.subr.mxu0 %v2122_v36 }
 0x45d   :  { %2000 = vmatprep.subr.mxu1 %v1071_v50  ;;  %2017 = vmatpush3.msra.mxu0 %v1196_v60 }
 0x45e   :  { %2001 = vmatpush3.msra.mxu1 %v1071_v50  ;;  %2018 = vmatprep.subr.mxu0 %v2122_v36 }
 0x45f   :  { %2002 = vmatprep.subr.mxu1 %v1070_v51  ;;  %2019 = vmatpush3.msra.mxu0 %v1195_v61 }
 0x460   :  { %2003 = vmatpush3.msra.mxu1 %v1070_v51  ;;  %2020 = vmatprep.subr.mxu0 %v2122_v36 }
 0x461   :  { %2004 = vmatprep.subr.mxu1 %v1069_v52  ;;  %2021 = vmatpush3.msra.mxu0 %v1194_v62 }
 0x462   :  { %2005 = vmatpush3.msra.mxu1 %v1069_v52  ;;  %2022 = vmatprep.subr.mxu0 %v2122_v36 }
 0x463   :  { %2007 = vmatmul.mubr.msk.f32.vlgmr.msra.gmra.mxu1 %vm78_vm0, %v1065_v53  ;;  %2036 = vmatprep.subr.mxu1 %v2122_v36 }
 0x464   :  { %2009 = vmatprep.mubr.msk.f32.mxu1 %vm78_vm0, %v1066_v54  ;;  %2037 = vmatpush3.msra.mxu1 %v1198_v56 }
 0x465   :  { %2038 = vmatprep.subr.mxu1 %v2122_v36  ;;  %2023 = vmatpush3.msra.mxu0 %v1193_v63 }
 0x466   :  { %2039 = vmatpush3.msra.mxu1 %v1197_v59  ;;  %2024 = vmatprep.subr.mxu0 %v2122_v36 }
 0x467   :  { %2010 = vmatmul.mubr.msk.f32.gmra.mxu1 %vm78_vm0, %v1067_v55  ;;  %2040 = vmatprep.subr.mxu1 %v2122_v36 }
 0x468   :  { %2052 = vmatprep.mubr.msk.f32.mxu1 %vm2123_vm1, %v2122_v36  ;;  %2041 = vmatpush3.msra.mxu1 %v1196_v60 }
 0x469   :  { %2042 = vmatprep.subr.mxu1 %v2122_v36  ;;  %2025 = vmatpush3.msra.mxu0 %v1192_v0 }
 0x46a   :  { %2043 = vmatpush3.msra.mxu1 %v1195_v61  ;;  %2026 = vmatprep.subr.mxu0 %v2122_v36 }
 0x46b   :  { %2044 = vmatprep.subr.mxu1 %v2122_v36  ;;  %2027 = vmatpush3.msra.mxu0 %v1191_v3 }
 0x46c   :  { %2045 = vmatpush3.msra.mxu1 %v1194_v62  ;;  %2031 = vmatprep.subr.mxu0 %v2122_v36 }
 0x46d   :  { %2046 = vmatprep.subr.mxu1 %v2122_v36 }
 0x46e   :  { %2047 = vmatpush3.msra.mxu1 %v1193_v63 }
 0x46f   :  { %2048 = vmatprep.subr.mxu1 %v2122_v36 }
 0x470   :  { %2049 = vmatpush3.msra.mxu1 %v1192_v0 }
 0x471   :  { %2050 = vmatprep.subr.mxu1 %v2122_v36 }
 0x472   :  { %2051 = vmatpush3.msra.mxu1 %v1191_v3 }
 0x512   :  { %v1964_v4 = vpop.f32.mrf.mxu1 }
 0x513   :  { %v1986_v5 = vpop.f32.mrf.mxu0 }
 0x514   :  { %v948_v6 = vpop.f32.mrf.mxu1  ;;  %v1051_v12 = vadd.f32 %v1986_v5, %v1964_v4 }
 0x515   :  { %v1045_v7 = vpop.f32.mrf.mxu0 }
 0x516   :  { %v1046_v13 = vadd.f32 %v1045_v7, %v948_v6 }
 0x517   :  { %v1967_v8 = vpop.f32.mrf.mxu1 }
 0x518   :  { %v1989_v9 = vpop.f32.mrf.mxu0 }
 0x519   :  { %v958_v10 = vpop.f32.mrf.mxu1  ;;  %v1061_v22 = vadd.f32 %v1989_v9, %v1967_v8 }
 0x51a   :  { %v1055_v14 = vpop.f32.mrf.mxu0 }
 0x51b   :  { %v1056_v24 = vadd.f32 %v1055_v14, %v958_v10  ;;  %v1453_v14 = vld [vmem:[%s2577_s10] sm:$0x1] }
 0x523   :  { %v2008_v11 = vpop.f32.mrf.mxu1 }
 0x524   :  { %v2497_v17 = vadd.f32 %v2008_v11, %v1051_v12  ;;  %v1449_v11 = vld [vmem:[%s2576_s9] sm:$0x1]  ;;  %s2124_s9 = smov [#allocation6]  }
 0x525   :  { %v1155_v15 = vpop.f32.mrf.mxu1  ;;  %s1639_s10 = sshll.u32 %s2124_s9, 4  ;;  %s1640_s10 = int_to_ptr.vmem [resolvable:$true] %s1639_s10 }
 0x526   :  { %v2499_v19 = vadd.f32 %v1155_v15, %v1046_v13  ;;  %v1179_v28 = vsel %vm78_vm0, %v2497_v17, 0.0  ;;  %s2095_s4 = scalar_lea.vmem %s1640_s10, 512  ;;  %p2100_p6 = scmp.lt.s32.totalorder %s1640_s10, %s1640_s10 }
 0x527   :  { %v2011_v20 = vpop.f32.mrf.mxu1  ;;  %p2096_p5 = scmp.ne.s32.totalorder %s1640_s10, %s2095_s4  ;;  %p2101_p7 = scmp.lt.s32.totalorder %s2095_s4, %s2095_s4 }
 0x528   :  { %v1178_v25 = vsel %vm78_vm0, %v2499_v19, 0.0  ;;  %v2505_v29 = vadd.f32 %v2011_v20, %v1061_v22 }
 0x529   :  { %v1165_v27 = vpop.f32.mrf.mxu1  ;;  %v1180_v31 = vadd.f32 %v1179_v28, %v1178_v25  ;;  %p2102_p8 = por %p2101_p7, %p2100_p6 }
 0x52a   :  { %v2507_v30 = vadd.f32 %v1165_v27, %v1056_v24  ;;  %v1183_v34 = vsel %vm78_vm0, %v2505_v29, 0.0 }
 0x52b   :  { %p2103_p9 = pnand %p2102_p8, %p2096_p5 }
 0x52c   :  { %v1181_v32 = vsel %vm78_vm0, %v2507_v30, 0.0 }
 0x52d   :  { %v1182_v33 = vadd.f32 %v1181_v32, %v1180_v31 }
 0x52f   :  { %v1184_v35 = vadd.f32 %v1183_v34, %v1182_v33 }
 0x531   :  { %v1185_v37 = vrot.slane %v1184_v35, 4 }
 0x533   :  { %v1186_v38 = vadd.f32 %v1185_v37, %v1184_v35 }
 0x535   :  { %v1187_v39 = vrot.slane %v1186_v38, 2 }
 0x537   :  { %v1188_v40 = vadd.f32 %v1187_v39, %v1186_v38 }
 0x539   :  { %v1189_v57 = vrot.slane %v1188_v40, 1 }
 0x53b   :  { %v1190_v58 = vadd.f32 %v1189_v57, %v1188_v40 }
 0x53d   :  { %2029 = vmatmul.mubr.msk.f32.vlgmr.msra.gmra.mxu0 %vm78_vm0, %v1190_v58 }
 0x53e   :  { %2032 = vmatpush3.msk.msra.mxu0 %vm488_vm2, %v1273_v1  ;;  %2033 = vmatprep.mubr.msk.f32.mxu0 %vm2123_vm1, %v2122_v36 }
 0x53f   :  { %2055 = vmatprep.subr.mxu0 %v2122_v36 }
 0x5fd   :  { %v1268_v2 = vpop.f32.mrf.mxu0 }
 0x5fe   :  { %v1272_v41 = vmul.f32 0.001953125, %v1268_v2 }
 0x5ff   :  { %v2030_v42 = vpop.f32.mrf.mxu0 }
 0x600   :  { %2034 = vmatmul.mubr.msk.f32.vlgmr.msra.gmra.mxu0 %vm484_vm3, %v1272_v41 }
 0x601   :  { %2056 = vmatpush3.msk.msra.mxu0 %vm488_vm2, %v1273_v1  ;;  %2057 = vmatprep.mubr.msk.f32.mxu0 %vm2123_vm1, %v2122_v36 }
 0x602   :  { %2060 = vmatprep.subr.mxu0 %v2122_v36 }
 0x6c0   :  { %v1346_v43 = vpop.f32.mrf.mxu0 }
 0x6c1   :  { %v1353_v44 = vrot.slane %v1346_v43, %v2405_v23 }
 0x6c2   :  { %v2035_v45 = vpop.f32.mrf.mxu0 }
 0x6c3   :  { %v1354_v46 = vsub.f32 %v2499_v19, %v1353_v44  ;;  %v1355_v47 = vsub.f32 %v2497_v17, %v1353_v44  ;;  %v1356_v48 = vsub.f32 %v2507_v30, %v1353_v44  ;;  %v1357_v49 = vsub.f32 %v2505_v29, %v1353_v44 }
 0x6c5   :  { %v1358_v50 = vmul.f32 %v1354_v46, %v1354_v46  ;;  %v1359_v51 = vmul.f32 %v1355_v47, %v1355_v47  ;;  %v1360_v52 = vmul.f32 %v1356_v48, %v1356_v48  ;;  %v1361_v53 = vmul.f32 %v1357_v49, %v1357_v49 }
 0x6c7   :  { %v1362_v54 = vsel %vm78_vm0, %v1358_v50, 0.0  ;;  %v1363_v55 = vsel %vm78_vm0, %v1359_v51, 0.0  ;;  %v1365_v59 = vsel %vm78_vm0, %v1360_v52, 0.0  ;;  %v1367_v61 = vsel %vm78_vm0, %v1361_v53, 0.0 }
 0x6c8   :  { %v1364_v56 = vadd.f32 %v1363_v55, %v1362_v54 }
 0x6ca   :  { %v1366_v60 = vadd.f32 %v1365_v59, %v1364_v56 }
 0x6cc   :  { %v1368_v62 = vadd.f32 %v1367_v61, %v1366_v60 }
 0x6ce   :  { %v1369_v63 = vrot.slane %v1368_v62, 4 }
 0x6d0   :  { %v1370_v0 = vadd.f32 %v1369_v63, %v1368_v62 }
 0x6d2   :  { %v1371_v3 = vrot.slane %v1370_v0, 2 }
 0x6d4   :  { %v1372_v4 = vadd.f32 %v1371_v3, %v1370_v0 }
 0x6d6   :  { %v1373_v5 = vrot.slane %v1372_v4, 1 }
 0x6d8   :  { %v1374_v6 = vadd.f32 %v1373_v5, %v1372_v4 }
 0x6da   :  { %2053 = vmatmul.mubr.msk.f32.vlgmr.msra.gmra.mxu1 %vm78_vm0, %v1374_v6 }
 0x79a   :  { %v1444_v7 = vpop.f32.mrf.mxu1 }
 0x79b   :  { %v1448_v8 = vmul.f32 0.001953125, %v1444_v7 }
 0x79c   :  { %v2054_v9 = vpop.f32.mrf.mxu1 }
 0x79d   :  { %v1450_v10 = vadd.f32 1e-05, %v1448_v8 }
 0x79f   :  { %2073 = vrsqrt.f32 %v1450_v10 }
 0x7ac   :  { %v2074_v12 = vpop.eup %2073 }
 0x7ad   :  { %v1452_v13 = vmul.f32 %v2074_v12, %v1449_v11 }
 0x7af   :  { %2058 = vmatmul.mubr.msk.f32.vlgmr.msra.gmra.mxu0 %vm484_vm3, %v1452_v13  ;;  %v1454_v15 = vmul.f32 %v1452_v13, %v1272_v41 }
 0x7b0   :  { %2061 = vmatpush3.msk.msra.mxu0 %vm488_vm2, %v1273_v1  ;;  %2062 = vmatprep.mubr.msk.f32.mxu0 %vm2123_vm1, %v2122_v36 }
 0x7b1   :  { %v1455_v20 = vsub.f32 %v1453_v14, %v1454_v15 }
 0x7b3   :  { %2063 = vmatmul.mubr.msk.f32.vlgmr.msra.gmra.mxu0 %vm484_vm3, %v1455_v20 }
 0x86f   :  { %v1525_v22 = vpop.f32.mrf.mxu0 }
 0x870   :  { %v1532_v24 = vrot.slane %v1525_v22, %v2405_v23 }
 0x871   :  { %v2059_v25 = vpop.f32.mrf.mxu0 }
 0x872   :  { %v1533_v27 = vmul.f32 %v1532_v24, %v2499_v19  ;;  %v1534_v31 = vmul.f32 %v1532_v24, %v2497_v17  ;;  %v1535_v32 = vmul.f32 %v1532_v24, %v2507_v30  ;;  %v1536_v33 = vmul.f32 %v1532_v24, %v2505_v29 }
 0x873   :  { %v1606_v28 = vpop.f32.mrf.mxu0 }
 0x874   :  { %v1613_v34 = vrot.slane %v1606_v28, %v2405_v23 }
 0x875   :  { %v2064_v35 = vpop.f32.mrf.mxu0 }
 0x876   :  { %v1614_v36 = vadd.f32 %v1613_v34, %v1533_v27  ;;  %v1615_v37 = vadd.f32 %v1613_v34, %v1534_v31  ;;  %v1616_v38 = vadd.f32 %v1613_v34, %v1535_v32  ;;  %v1617_v39 = vadd.f32 %v1613_v34, %v1536_v33 }
 0x878   :  { %v1622_v40 = vadd.f32 %v1614_v36, %v2242_v16  ;;  %v1623_v19 = vadd.f32 %v1615_v37, %v2250_v18  ;;  %v1624_v57 = vadd.f32 %v1616_v38, %v2263_v21  ;;  %v1625_v17 = vadd.f32 %v1617_v39, %v2287_v26 }
 0x87a   :  { %v1626_v30 = vmax.f32 %v1622_v40, 0.0  ;;  %v1627_v58 = vmax.f32 %v1623_v19, 0.0  ;;  %v1628_v29 = vmax.f32 %v1624_v57, 0.0  ;;  %v1629_v1 = vmax.f32 %v1625_v17, 0.0 }
 0x87c   :  { %1630 = vst.msk [vmem:[#allocation6] sm:$0xff] %vm78_vm0, %v1626_v30  ;;  %1631 = vst.msk [vmem:[#allocation6 + $0x8] sm:$0xff] %vm78_vm0, %v1627_v58 }
 0x87d   :  { %1632 = vst.msk [vmem:[#allocation6 + $0x10] sm:$0xff] %vm78_vm0, %v1628_v29  ;;  %1633 = vst.msk [vmem:[#allocation6 + $0x18] sm:$0xff] %vm78_vm0, %v1629_v1 }
 0x87e   :  { %2106 = shalt.err (!%p2103_p9)
}
 0x87f   :  { %1645 = dma.vmem_to_hbm [thread:$0]  %s1640_s10, 512, %s2578_s11, [#allocation5], %s2120_s20, %s2120_s20, %s2121_s21  }
 0x880   :  { %2117 = dma.done.wait [#allocation5], 512  }
 0x881   :  { %2118 = vsyncadd [#allocation5], 4294966784 }
 0x882   :  { %1649 = vsyncpa [#allocation4], 1 }
 0x883   :  { %1650 = vsyncpa [#allocation5], 1 }

</bundles_post_ra>
